<compile_context>
chip_gen: v7x
topology: tpu7x:2x2x1
jax: 0.10.0
libtpu: 0.0.40
codegen_flags: <defaults>
</compile_context>

<pallas_src>
import functools

import jax
import jax.numpy as jnp
from jax.experimental import pallas as pl
from jax.experimental.pallas import tpu as pltpu


LANE = 128          # lane width of the packed weight buffer
BIAS_ROWS = 8       # one (8, LANE) sublane tile holding the three bias rows
SUB = 128           # in-kernel compute sub-chunk (rows); ~16 vregs per stage


def _ceil_to(x, m):
    return ((x + m - 1) // m) * m


# ----------------------------- Pallas kernel ------------------------------ #
def _mmppp_fused_kernel(w_ref, p_ref, out_ref, *, in_dim, hidden, r1, rm, r2, sub):
    """Fused (folded) autoencoder forward on one batch tile.

    Packed-parameter layout (rows of a (r1+rm+r2+8, 128) f32 buffer):
        [0        : in_dim)        cols [0:hidden)  enc_w1
        [r1       : r1+hidden)     cols [0:hidden)  enc_w2 @ dec_w1 (folded)
        [r1+rm    : r1+rm+hidden)  cols [0:in_dim)  dec_w2
        row r1+rm+r2               cols [0:hidden)  enc_b1
        row r1+rm+r2+1             cols [0:hidden)  enc_b2 @ dec_w1 + dec_b1
        row r1+rm+r2+2             cols [0:in_dim)  dec_b2
    """
    tile = out_ref.shape[0]
    bo = r1 + rm + r2

    # Weight slabs: loaded + cast to bf16 once per grid step (hoisted out of
    # the sub-chunk loop).  bf16 operands keep the MXU on its native path on
    # v6e/v7x; accumulation stays f32 via preferred_element_type.
    w1 = p_ref[0:in_dim, 0:hidden].astype(jnp.bfloat16)                   # (in_dim, hidden)
    wm = p_ref[r1:r1 + hidden, 0:hidden].astype(jnp.bfloat16)             # (hidden, hidden)
    w2 = p_ref[r1 + rm:r1 + rm + hidden, 0:in_dim].astype(jnp.bfloat16)   # (hidden, in_dim)
    b1 = p_ref[bo:bo + 1, 0:hidden]                                       # (1, hidden) f32
    bm = p_ref[bo + 1:bo + 2, 0:hidden]                                   # (1, hidden) f32
    b2 = p_ref[bo + 2:bo + 3, 0:in_dim]                                   # (1, in_dim) f32

    def chunk(start, size):
        wc = w_ref[pl.ds(start, size), :].astype(jnp.bfloat16)            # (size, in_dim)
        # encoder layer 1 + ReLU
        h = jnp.dot(wc, w1, preferred_element_type=jnp.float32)
        h = jnp.maximum(h + b1, 0.0)
        # folded (enc layer 2  o  dec layer 1) + ReLU
        g = jnp.dot(h.astype(jnp.bfloat16), wm, preferred_element_type=jnp.float32)
        g = jnp.maximum(g + bm, 0.0)
        # decoder layer 2 (60-lane masked store)
        r = jnp.dot(g.astype(jnp.bfloat16), w2, preferred_element_type=jnp.float32) + b2
        out_ref[pl.ds(start, size), :] = r.astype(out_ref.dtype)

    # Decouple the DMA tile (big, for HBM efficiency) from the compute tile
    # (small, for vreg pressure).  Chunk count / remainder are static.
    n_full = tile // sub
    rem = tile - n_full * sub
    if n_full > 0:
        def body(c, carry):
            chunk(pl.multiple_of(c * sub, sub), sub)
            return carry
        jax.lax.fori_loop(0, n_full, body, None, unroll=True)
    if rem > 0:
        chunk(n_full * sub, rem)


# ------------------------------ host wrapper ------------------------------ #
def pack_params(params):
    """Fold the middle linears and pack weights + biases into one small buffer."""
    hi = jax.lax.Precision.HIGHEST
    in_dim, hidden = params["enc_w1"].shape
    assert in_dim <= LANE and hidden <= LANE

    # Fold: z = h @ We2 + be2 ; g_pre = z @ Wd1 + bd1  ==>  g_pre = h @ Wm + bm
    w_mid = jnp.dot(params["enc_w2"], params["dec_w1"], precision=hi)
    b_mid = jnp.dot(params["enc_b2"], params["dec_w1"], precision=hi) + params["dec_b1"]

    r1, rm, r2 = _ceil_to(in_dim, 8), _ceil_to(hidden, 8), _ceil_to(hidden, 8)
    rows = r1 + rm + r2 + BIAS_ROWS
    bo = r1 + rm + r2

    buf = jnp.zeros((rows, LANE), jnp.float32)
    buf = buf.at[0:in_dim, 0:hidden].set(params["enc_w1"])
    buf = buf.at[r1:r1 + hidden, 0:hidden].set(w_mid)
    buf = buf.at[r1 + rm:r1 + rm + hidden, 0:in_dim].set(params["dec_w2"])
    buf = buf.at[bo, 0:hidden].set(params["enc_b1"][0])
    buf = buf.at[bo + 1, 0:hidden].set(b_mid[0])
    buf = buf.at[bo + 2, 0:in_dim].set(params["dec_b2"][0])
    return buf                                  # (136, 128) f32, ~68 KB


@functools.partial(jax.jit, static_argnames=("hidden_dim", "tile_rows"))
def mmppp_forward(w, packed_params, hidden_dim, *, tile_rows=1024):
    """Run the fused MMPpp forward (encode -> decode) in one pallas_call.

    w:             (bs, in_dim) float32   (ProMP weight vectors, in_dim = b*dof)
    packed_params: (136, 128)   float32   (from pack_params)
    hidden_dim:    static int             (encoder/decoder hidden width)
    returns recon: (bs, in_dim) float32
    """
    bs, in_dim = w.shape
    assert in_dim <= LANE and hidden_dim <= LANE
    r1, rm, r2 = _ceil_to(in_dim, 8), _ceil_to(hidden_dim, 8), _ceil_to(hidden_dim, 8)
    rows = r1 + rm + r2 + BIAS_ROWS
    assert packed_params.shape == (rows, LANE), packed_params.shape

    # --- batch tiling -------------------------------------------------------
    bs_r = _ceil_to(bs, 8)                       # sublane-aligned batch rows
    tile = min(_ceil_to(tile_rows, 8), bs_r)     # big DMA tile for HBM efficiency
    if bs_r >= 16:                               # keep >= 2 grid steps so v7x's
        tile = min(tile, _ceil_to((bs_r + 1) // 2, 8))   # two TCs both get work
    bs_pad = _ceil_to(bs_r, tile)
    grid = (bs_pad // tile,)

    w_in = w if bs_pad == bs else jnp.pad(w, ((0, bs_pad - bs), (0, 0)))

    kernel = functools.partial(
        _mmppp_fused_kernel,
        in_dim=in_dim, hidden=hidden_dim, r1=r1, rm=rm, r2=r2, sub=SUB)

    out = pl.pallas_call(
        kernel,
        out_shape=jax.ShapeDtypeStruct((bs_pad, in_dim), jnp.float32),
        grid_spec=pltpu.PrefetchScalarGridSpec(
            num_scalar_prefetch=0,
            grid=grid,
            in_specs=[
                pl.BlockSpec((tile, in_dim), lambda i: (i, 0)),   # streamed batch
                pl.BlockSpec((rows, LANE), lambda i: (0, 0)),     # resident weights
            ],
            out_specs=pl.BlockSpec((tile, in_dim), lambda i: (i, 0)),
        ),
        compiler_params=pltpu.CompilerParams(
            dimension_semantics=("parallel",),   # lets v7x split batch across TCs
        ),
    )(w_in, packed_params)

    return out if bs_pad == bs else out[:bs]


# --------------------------- parameter set-up ----------------------------- #
def init_params(key, in_dim, hidden_dim, latent_dim):
    """Deterministic synthetic parameters for the encoder/decoder MLPs.

    encoder: Linear(in_dim -> hidden) + ReLU + Linear(hidden -> latent)
    decoder: Linear(latent -> hidden) + ReLU + Linear(hidden -> in_dim)
    Weights stored as (in_features, out_features).
    """
    ks = jax.random.split(key, 4)
    scale = 0.1
    return {
        "enc_w1": scale * jax.random.normal(ks[0], (in_dim, hidden_dim), jnp.float32),
        "enc_b1": jnp.zeros((1, hidden_dim), jnp.float32),
        "enc_w2": scale * jax.random.normal(ks[1], (hidden_dim, latent_dim), jnp.float32),
        "enc_b2": jnp.zeros((1, latent_dim), jnp.float32),
        "dec_w1": scale * jax.random.normal(ks[2], (latent_dim, hidden_dim), jnp.float32),
        "dec_b1": jnp.zeros((1, hidden_dim), jnp.float32),
        "dec_w2": scale * jax.random.normal(ks[3], (hidden_dim, in_dim), jnp.float32),
        "dec_b2": jnp.zeros((1, in_dim), jnp.float32),
    }


def reference_forward_f32(w, p):
    """Pure-JAX f32 reference of the un-folded forward pass (semantic check)."""
    hi = jax.lax.Precision.HIGHEST
    h = jnp.maximum(jnp.dot(w, p["enc_w1"], precision=hi) + p["enc_b1"], 0.0)
    z = jnp.dot(h, p["enc_w2"], precision=hi) + p["enc_b2"]
    g = jnp.maximum(jnp.dot(z, p["dec_w1"], precision=hi) + p["dec_b1"], 0.0)
    return jnp.dot(g, p["dec_w2"], precision=hi) + p["dec_b2"]


def reference_forward_matched(w, p):
    """Folded, bf16-operand / f32-accumulate reference matching the kernel math."""
    bf = jnp.bfloat16
    hi = jax.lax.Precision.HIGHEST
    w_mid = jnp.dot(p["enc_w2"], p["dec_w1"], precision=hi)
    b_mid = jnp.dot(p["enc_b2"], p["dec_w1"], precision=hi) + p["dec_b1"]
    h = jnp.dot(w.astype(bf), p["enc_w1"].astype(bf), preferred_element_type=jnp.float32)
    h = jnp.maximum(h + p["enc_b1"], 0.0)
    g = jnp.dot(h.astype(bf), w_mid.astype(bf), preferred_element_type=jnp.float32)
    g = jnp.maximum(g + b_mid, 0.0)
    return jnp.dot(g.astype(bf), p["dec_w2"].astype(bf),
                   preferred_element_type=jnp.float32) + p["dec_b2"]


# --------------------------------- main ----------------------------------- #
if __name__ == "__main__":
    # Module hyper-params: b=30 basis functions, dof=2  ->  w is (bs, 60).
    b, dof = 30, 2
    in_dim = b * dof          # 60
    hidden_dim = 32
    latent_dim = 4

    key = jax.random.PRNGKey(0)
    k_w, k_p = jax.random.split(key)

    params = init_params(k_p, in_dim, hidden_dim, latent_dim)
    packed = pack_params(params)

    # In the real module, w = get_w_from_traj(x).view(bs, -1) (ProMP basis
    # regression).  forward() only consumes w, so we synthesize it here.
    # TODO(synk): LfD / Gaussian_basis trajectory->weight regression, GMM
    # fitting/sampling and MMD eval are upstream/downstream of forward() and
    # are not part of this kernel.
    for bs in (8, 300):       # small batch + one exercising multi-tile / sub-chunk / remainder
        w = jax.random.normal(jax.random.fold_in(k_w, bs), (bs, in_dim), jnp.float32)
        recon = jax.block_until_ready(mmppp_forward(w, packed, hidden_dim))
        assert recon.shape == (bs, in_dim)

        ref_m = reference_forward_matched(w, params)   # same precision as kernel
        ref_f = reference_forward_f32(w, params)       # full-f32 semantics
        err_m = float(jnp.max(jnp.abs(recon - ref_m)))
        err_f = float(jnp.max(jnp.abs(recon - ref_f)))
        assert jnp.allclose(recon, ref_m, atol=2e-3, rtol=2e-3), (bs, err_m)
        assert jnp.allclose(recon, ref_f, atol=2e-2, rtol=2e-2), (bs, err_f)

    print("KERNEL_OK")
</pallas_src>

<mosaic_0001>
module attributes {stable_mosaic.version = 11 : i64} {
  func.func @_mmppp_fused_kernel(%arg0: i32, %arg1: memref<8x60xf32, #tpu.memory_space<vmem>>, %arg2: memref<136x128xf32, #tpu.memory_space<vmem>>, %arg3: memref<8x60xf32, #tpu.memory_space<vmem>>) attributes {dimension_semantics = [#tpu.dimension_semantics<parallel>], iteration_bounds = array<i64: 1>, scalar_prefetch = 0 : i64, scratch_operands = 0 : i64, tpu.core_type = #tpu.core_type<tc>, window_params = [{transform_indices = @transform_0, window_bounds = array<i64: 8, 60>}, {pipeline_mode = #tpu.pipeline_mode<synchronous>, transform_indices = @transform_1, window_bounds = array<i64: 136, 128>}, {transform_indices = @transform_2, window_bounds = array<i64: 8, 60>}]} {
    %c0 = arith.constant 0 : index
    %c0_0 = arith.constant 0 : index
    %0 = vector.load %arg2[%c0, %c0_0] : memref<136x128xf32, #tpu.memory_space<vmem>>, vector<60x32xf32>
    %1 = arith.truncf %0 : vector<60x32xf32> to vector<60x32xbf16>
    %c64 = arith.constant 64 : index
    %c0_1 = arith.constant 0 : index
    %2 = vector.load %arg2[%c64, %c0_1] : memref<136x128xf32, #tpu.memory_space<vmem>>, vector<32x32xf32>
    %3 = arith.truncf %2 : vector<32x32xf32> to vector<32x32xbf16>
    %c96 = arith.constant 96 : index
    %c0_2 = arith.constant 0 : index
    %4 = vector.load %arg2[%c96, %c0_2] : memref<136x128xf32, #tpu.memory_space<vmem>>, vector<32x60xf32>
    %5 = arith.truncf %4 : vector<32x60xf32> to vector<32x60xbf16>
    %c128 = arith.constant 128 : index
    %c0_3 = arith.constant 0 : index
    %6 = vector.load %arg2[%c128, %c0_3] : memref<136x128xf32, #tpu.memory_space<vmem>>, vector<1x32xf32>
    %c129 = arith.constant 129 : index
    %c0_4 = arith.constant 0 : index
    %7 = vector.load %arg2[%c129, %c0_4] : memref<136x128xf32, #tpu.memory_space<vmem>>, vector<1x32xf32>
    %c130 = arith.constant 130 : index
    %c0_5 = arith.constant 0 : index
    %8 = vector.load %arg2[%c130, %c0_5] : memref<136x128xf32, #tpu.memory_space<vmem>>, vector<1x60xf32>
    %c0_6 = arith.constant 0 : index
    %c0_7 = arith.constant 0 : index
    %9 = vector.load %arg1[%c0_6, %c0_7] : memref<8x60xf32, #tpu.memory_space<vmem>>, vector<8x60xf32>
    %10 = arith.truncf %9 : vector<8x60xf32> to vector<8x60xbf16>
    %cst = arith.constant dense<0.000000e+00> : vector<8x32xf32>
    %11 = tpu.matmul %10, %1, %cst {dimension_numbers = #tpu.dot_dimension_numbers<[1], [0], [0], [1], [0, 0, 1, 1], [], []>} : vector<8x60xbf16>, vector<60x32xbf16>, vector<8x32xf32> -> vector<8x32xf32>
    %12 = vector.broadcast %6 : vector<1x32xf32> to vector<8x32xf32>
    %13 = arith.addf %11, %12 : vector<8x32xf32>
    %cst_8 = arith.constant 0.000000e+00 : f32
    %14 = vector.broadcast %cst_8 : f32 to vector<8x32xf32>
    %15 = arith.maximumf %13, %14 : vector<8x32xf32>
    %16 = arith.truncf %15 : vector<8x32xf32> to vector<8x32xbf16>
    %cst_9 = arith.constant dense<0.000000e+00> : vector<8x32xf32>
    %17 = tpu.matmul %16, %3, %cst_9 {dimension_numbers = #tpu.dot_dimension_numbers<[1], [0], [0], [1], [0, 0, 1, 1], [], []>} : vector<8x32xbf16>, vector<32x32xbf16>, vector<8x32xf32> -> vector<8x32xf32>
    %18 = vector.broadcast %7 : vector<1x32xf32> to vector<8x32xf32>
    %19 = arith.addf %17, %18 : vector<8x32xf32>
    %cst_10 = arith.constant 0.000000e+00 : f32
    %20 = vector.broadcast %cst_10 : f32 to vector<8x32xf32>
    %21 = arith.maximumf %19, %20 : vector<8x32xf32>
    %22 = arith.truncf %21 : vector<8x32xf32> to vector<8x32xbf16>
    %cst_11 = arith.constant dense<0.000000e+00> : vector<8x60xf32>
    %23 = tpu.matmul %22, %5, %cst_11 {dimension_numbers = #tpu.dot_dimension_numbers<[1], [0], [0], [1], [0, 0, 1, 1], [], []>} : vector<8x32xbf16>, vector<32x60xbf16>, vector<8x60xf32> -> vector<8x60xf32>
    %24 = vector.broadcast %8 : vector<1x60xf32> to vector<8x60xf32>
    %25 = arith.addf %23, %24 : vector<8x60xf32>
    %c0_12 = arith.constant 0 : index
    %c0_13 = arith.constant 0 : index
    %26 = vector.load %arg3[%c0_12, %c0_13] : memref<8x60xf32, #tpu.memory_space<vmem>>, vector<8x60xf32>
    tpu.vector_store %arg3[%c0_12, %c0_13], %25 {strides = array<i32>} : memref<8x60xf32, #tpu.memory_space<vmem>>, vector<8x60xf32>,
    return
  }
  func.func @transform_0(%arg0: i32) -> (i32, i32) {
    %c0_i32 = arith.constant 0 : i32
    %c0_i32_0 = arith.constant 0 : i32
    return %arg0, %c0_i32 : i32, i32
  }
  func.func @transform_1(%arg0: i32) -> (i32, i32) {
    %c0_i32 = arith.constant 0 : i32
    %c0_i32_0 = arith.constant 0 : i32
    %c0_i32_1 = arith.constant 0 : i32
    return %c0_i32, %c0_i32_0 : i32, i32
  }
  func.func @transform_2(%arg0: i32) -> (i32, i32) {
    %c0_i32 = arith.constant 0 : i32
    %c0_i32_0 = arith.constant 0 : i32
    return %arg0, %c0_i32 : i32, i32
  }
}

</mosaic_0001>

<bundles_post_ra>
// kernel: mmppp_forward.1
= control target key start
LH: loop header
LB: loop body
LE: loop exit
PB: predicated region body
PF: predicated region fallthrough
CT: control target
= control target key end

     0   :  { %7 = vsyncpa [#allocation3], 0  ;;  %s432_s0 = inlined_call_operand.hbm [shape: f32[8,60], index: 0, kind: input, shape index: {}]   ;;  %s433_s1 = inlined_call_operand.hbm [shape: f32[136,128], index: 1, kind: input, shape index: {}]   ;;  %s434_s2 = inlined_call_operand.hbm [shape: f32[8,60], index: 2, kind: output, shape index: {}]  }
   0x1   :  { %8 = vsyncpa [#allocation6], 0 }
   0x2   :  { %9 = vsyncpa [#allocation4], 0  ;;  %s360_s9 = smov [#allocation2]   ;;  %s361_s11 = smov [#allocation5]  }
   0x3   :  { %s16_s10 = sshll.u32 %s360_s9, 4  ;;  %s25_s12 = sshll.u32 %s361_s11, 4  ;;  %s17_s10 = int_to_ptr.vmem [resolvable:$true] %s16_s10  ;;  %s382_s12 = int_to_ptr.vmem [resolvable:$true] %s25_s12 }
   0x4   :  { %s288_s15 = scalar_lea.hbm %s432_s0, 128 }
   0x5   :  { %p289_p0 = scmp.ne.s32.totalorder %s432_s0, %s288_s15  ;;  %p292_p1 = scmp.lt.u32.totalorder %s288_s15, %s432_s0 }
   0x7   :  { %p294_p2 = pnand %p292_p1, %p289_p0 }
   0x9   :  { %297 = shalt.err (!%p294_p2)
}
   0xa   :  { %s298_s20 = scalar_lea.vmem %s17_s10, 128  ;;  %p303_p4 = scmp.lt.s32.totalorder %s17_s10, %s17_s10 }
   0xb   :  { %p299_p3 = scmp.ne.s32.totalorder %s17_s10, %s298_s20  ;;  %p304_p5 = scmp.lt.s32.totalorder %s298_s20, %s298_s20 }
   0xd   :  { %p305_p6 = por %p304_p5, %p303_p4 }
   0xf   :  { %p306_p7 = pnand %p305_p6, %p299_p3 }
  0x11   :  { %309 = shalt.err (!%p306_p7)
}
  0x12   :  { %19 = dma.hbm_to_vmem [thread:$0]  %s432_s0, 128, %s17_s10, [#allocation3]  }
  0x13   :  { %s310_s25 = scalar_lea.hbm %s433_s1, 2176 }
  0x14   :  { %p311_p8 = scmp.ne.s32.totalorder %s433_s1, %s310_s25  ;;  %p314_p9 = scmp.lt.u32.totalorder %s310_s25, %s433_s1 }
  0x16   :  { %p316_p10 = pnand %p314_p9, %p311_p8 }
  0x18   :  { %319 = shalt.err (!%p316_p10)
}
  0x19   :  { %s320_s30 = scalar_lea.vmem %s382_s12, 2176  ;;  %p325_p12 = scmp.lt.s32.totalorder %s382_s12, %s382_s12 }
  0x1a   :  { %p321_p11 = scmp.ne.s32.totalorder %s382_s12, %s320_s30  ;;  %p326_p13 = scmp.lt.s32.totalorder %s320_s30, %s320_s30 }
  0x1c   :  { %p327_p0 = por %p326_p13, %p325_p12 }
  0x1e   :  { %p328_p1 = pnand %p327_p0, %p321_p11 }
  0x20   :  { %331 = shalt.err (!%p328_p1)
}
  0x21   :  { %s362_s0 = smov 128   ;;  %s363_s3 = smov 8  }
  0x22   :  { %31 = dma.hbm_to_vmem [thread:$0]  %s433_s1, 2176, %s382_s12, [#allocation6], %s362_s0, %s362_s0, %s363_s3  }
  0x23   :  { %354 = dma.done.wait [#allocation3], 128  }
  0x24   :  { %355 = vsyncadd [#allocation3], 4294967168 }
  0x25   :  { %356 = dma.done.wait [#allocation6], 2176  }
  0x26   :  { %357 = vsyncadd [#allocation6], 4294965120  ;;  %v364_v0 = vmov 0.0   ;;  %vm365_vm0 = vmmov 0   ;;  %v39_v1 = vld [vmem:[#allocation5] sm:$0xff]  ;;  %v40_v2 = vld [vmem:[#allocation5 + $0x8] sm:$0xff] }
  0x27   :  { %253 = vmatprep.subr.bf16.mxu0 %v364_v0  ;;  %261 = vmatprep.mubr.msk.bf16.mxu0 %vm365_vm0, %v364_v0  ;;  %v41_v3 = vld [vmem:[#allocation5 + $0x10] sm:$0xff]  ;;  %v47_v4 = vpack.c.bf16 %v40_v2, %v39_v1  ;;  %v42_v5 = vld [vmem:[#allocation5 + $0x18] sm:$0xff]  ;;  %v43_v7 = vld [vmem:[#allocation5 + $0x20] sm:$0xff]  ;;  %vm76_vm1 = vcmask 1045504   ;;  %vm72_vm2 = vcmask 490496   ;;  %vm126_vm3 = vcmask 261120  }
  0x28   :  { %265 = vmatprep.subr.bf16.mxu1 %v364_v0  ;;  %269 = vmatprep.mubr.msk.bf16.mxu1 %vm365_vm0, %v364_v0  ;;  %v48_v6 = vpack.c.bf16 %v42_v5, %v41_v3  ;;  %v44_v8 = vld [vmem:[#allocation5 + $0x28] sm:$0xff]  ;;  %v45_v9 = vld [vmem:[#allocation5 + $0x30] sm:$0xff]  ;;  %v46_v10 = vld [vmem:[#allocation5 + $0x38] sm:$0xf]  ;;  %s366_s1 = smov [#allocation7]  }
  0x29   :  { %254 = vmatpush3.bf16.msra.mxu0 %v47_v4  ;;  %v49_v11 = vpack.c.bf16 %v44_v8, %v43_v7  ;;  %v50_v12 = vpack.c.bf16 %v46_v10, %v45_v9  ;;  %v66_v13 = vld [vmem:[#allocation2] sm:$0xff]  ;;  %v51_v16 = vld [vmem:[#allocation5 + $0x40] sm:$0xff]  ;;  %v52_v17 = vld [vmem:[#allocation5 + $0x48] sm:$0xff]  ;;  %s226_s6 = sshll.u32 %s366_s1, 4  ;;  %s227_s6 = int_to_ptr.vmem [resolvable:$true] %s226_s6 }
  0x2a   :  { %255 = vmatprep.subr.bf16.mxu0 %v364_v0  ;;  %v67_v15 = vpack.c.bf16 %v66_v13, %v66_v13  ;;  %v55_v18 = vpack.c.bf16 %v52_v17, %v51_v16  ;;  %v53_v19 = vld [vmem:[#allocation5 + $0x50] sm:$0xff]  ;;  %v54_v20 = vld [vmem:[#allocation5 + $0x58] sm:$0xff]  ;;  %v236_v22 = vld [vmem:[#allocation5 + $0x80] ss:$0 sm:$0xff]  ;;  %s332_s7 = scalar_lea.vmem %s227_s6, 128  ;;  %p337_p3 = scmp.lt.s32.totalorder %s227_s6, %s227_s6 }
  0x2b   :  { %v78_v14 = vsel %vm76_vm1, %v50_v12, 0  ;;  %v56_v21 = vpack.c.bf16 %v54_v20, %v53_v19  ;;  %v57_v26 = vld [vmem:[#allocation5 + $0x60] sm:$0xff]  ;;  %v58_v27 = vld [vmem:[#allocation5 + $0x68] sm:$0xff]  ;;  %v59_v33 = vld [vmem:[#allocation5 + $0x70] sm:$0xff]  ;;  %p333_p2 = scmp.ne.s32.totalorder %s227_s6, %s332_s7  ;;  %p338_p4 = scmp.lt.s32.totalorder %s332_s7, %s332_s7 }
  0x2c   :  { %266 = vmatpush3.bf16.msra.mxu1 %v55_v18  ;;  %v61_v31 = vpack.c.bf16 %v58_v27, %v57_v26  ;;  %v60_v34 = vld [vmem:[#allocation5 + $0x78] sm:$0xff]  ;;  %v238_v36 = vld [vmem:[#allocation5 + $0x81] ss:$0 sm:$0xff]  ;;  %v240_v44 = vld [vmem:[#allocation5 + $0x82] ss:$0 sm:$0xff] }
  0x2d   :  { %256 = vmatpush3.bf16.msra.mxu0 %v48_v6  ;;  %267 = vmatprep.subr.bf16.mxu1 %v364_v0  ;;  %v62_v35 = vpack.c.bf16 %v60_v34, %v59_v33  ;;  %p339_p5 = por %p338_p4, %p337_p3 }
  0x2e   :  { %257 = vmatprep.subr.bf16.mxu0 %v364_v0 }
  0x2f   :  { %p340_p6 = pnand %p339_p5, %p333_p2 }
  0x30   :  { %268 = vmatpush3.bf16.msra.mxu1 %v56_v21 }
  0x31   :  { %258 = vmatpush3.bf16.msra.mxu0 %v49_v11  ;;  %273 = vmatprep.subr.bf16.mxu1 %v364_v0 }
  0x32   :  { %259 = vmatprep.subr.bf16.mxu0 %v364_v0 }
  0x35   :  { %260 = vmatpush3.bf16.msra.mxu0 %v78_v14 }
  0x38   :  { %262 = vmatmul.mubr.msk.bf16.vlgmr.msra.gmra.mrb[0].mxu0 %vm72_vm2, %v67_v15 }
 0x10b   :  { %v114_v23 = vpop.f32.mrb[0].mxu0 }
 0x10c   :  { %v115_v24 = vadd.f32 %v236_v22, %v114_v23  ;;  %v263_v25 = vpop.f32.mrb[1].mxu0 }
 0x10d   :  { %v117_v28 = vpop.f32.mrb[2].mxu0 }
 0x10e   :  { %v120_v29 = vmax.f32 %v115_v24, 0.0  ;;  %v264_v30 = vpop.f32.mrb[3].mxu0 }
 0x110   :  { %v121_v32 = vpack.c.bf16 %v120_v29, %v120_v29 }
 0x112   :  { %270 = vmatmul.mubr.msk.bf16.vlgmr.msra.gmra.mrb[0].mxu1 %vm126_vm3, %v121_v32 }
 0x113   :  { %274 = vmatpush3.bf16.msra.mxu1 %v61_v31  ;;  %277 = vmatprep.mubr.msk.bf16.mxu1 %vm365_vm0, %v364_v0 }
 0x114   :  { %275 = vmatprep.subr.bf16.mxu1 %v364_v0 }
 0x117   :  { %276 = vmatpush3.bf16.msra.mxu1 %v62_v35 }
 0x1e5   :  { %v164_v37 = vpop.f32.mrb[0].mxu1 }
 0x1e6   :  { %v165_v38 = vadd.f32 %v238_v36, %v164_v37  ;;  %v271_v39 = vpop.f32.mrb[1].mxu1 }
 0x1e7   :  { %v167_v40 = vpop.f32.mrb[2].mxu1 }
 0x1e8   :  { %v170_v41 = vmax.f32 %v165_v38, 0.0  ;;  %v272_v42 = vpop.f32.mrb[3].mxu1 }
 0x1ea   :  { %v171_v43 = vpack.c.bf16 %v170_v41, %v170_v41 }
 0x1ec   :  { %278 = vmatmul.mubr.msk.bf16.vlgmr.msra.gmra.mrb[4].mxu1 %vm126_vm3, %v171_v43 }
 0x2bf   :  { %v213_v45 = vpop.f32.mrb[4].mxu1 }
 0x2c0   :  { %v214_v46 = vadd.f32 %v240_v44, %v213_v45  ;;  %v279_v47 = vpop.f32.mrb[5].mxu1 }
 0x2c1   :  { %v216_v48 = vpop.f32.mrb[6].mxu1 }
 0x2c2   :  { %219 = vst.msk [vmem:[#allocation7] sm:$0xff] %vm72_vm2, %v214_v46  ;;  %v280_v49 = vpop.f32.mrb[7].mxu1 }
 0x2c3   :  { %343 = shalt.err (!%p340_p6)
}
 0x2c4   :  { %s344_s10 = scalar_lea.hbm %s434_s2, 128 }
 0x2c5   :  { %p345_p7 = scmp.ne.s32.totalorder %s434_s2, %s344_s10  ;;  %p348_p8 = scmp.lt.u32.totalorder %s344_s10, %s434_s2 }
 0x2c7   :  { %p350_p9 = pnand %p348_p8, %p345_p7 }
 0x2c9   :  { %353 = shalt.err (!%p350_p9)
}
 0x2ca   :  { %229 = dma.vmem_to_hbm [thread:$0]  %s227_s6, 128, %s434_s2, [#allocation4]  }
 0x2cb   :  { %358 = dma.done.wait [#allocation4], 128  }
 0x2cc   :  { %359 = vsyncadd [#allocation4], 4294967168 }
 0x2cd   :  { %233 = vsyncpa [#allocation3], 1 }
 0x2ce   :  { %234 = vsyncpa [#allocation6], 1 }
 0x2cf   :  { %235 = vsyncpa [#allocation4], 1 }

</bundles_post_ra>
